<compile_context>
chip_gen: v7x
topology: tpu7x:2x2x1
jax: 0.10.0
libtpu: 0.0.40
codegen_flags: <defaults>
</compile_context>

<pallas_src>
import functools

import jax
import jax.numpy as jnp
from jax.experimental import pallas as pl
from jax.experimental.pallas import tpu as pltpu


def _vmem_budget_bytes():
    """Generation-aware scoped-VMEM budget (leave headroom for compiler scratch)."""
    cap = None
    try:
        info = pltpu.get_tpu_info()
        cap = getattr(info, "vmem_capacity_bytes", None)
    except Exception:
        cap = None
    if cap is None:
        cap = 64 * 1024 * 1024          # conservative default: assume v7x-class
    return min(int(cap * 3 // 4), 100 * 1024 * 1024)


VMEM_LIMIT = _vmem_budget_bytes()
_BIG_VMEM = VMEM_LIMIT >= 72 * 1024 * 1024          # v5e/v6e-class (128 MiB phys)

# tile preference lists (largest first); v5e/v6e can afford 512-wide tiles
_ROW_TILE_PREFS = (512, 256, 128) if _BIG_VMEM else (256, 128)
_MM_TILE_PREFS = (512, 256, 128) if _BIG_VMEM else (256, 128)
_MM_K_PREFS = (512, 256, 128)


def _pick_tile(n, prefs):
    """Largest preferred tile that divides n, else the full dimension."""
    for p in prefs:
        if n % p == 0:
            return p
    return n


# ----------------------------------------------------------------------------
# Kernel 1: GTConv (+ optional softmax_norm).  grid = (row-slab,)
#           All channels are produced from one read of the A row-slab.
# ----------------------------------------------------------------------------
def _gtconv_kernel(w_ref, a_ref, out_ref, *, num_edge, num_channels, normalize):
    # w_ref  : SMEM (C, E) f32 scalar weights
    # a_ref  : VMEM (E, tm, N) bf16 row slab of all edge-type adjacencies
    # out_ref: VMEM (C, tm, N) bf16
    for c in range(num_channels):
        s = w_ref[c, 0] * a_ref[0].astype(jnp.float32)
        for e in range(1, num_edge):
            s = s + w_ref[c, e] * a_ref[e].astype(jnp.float32)
        if normalize:
            # numerically-stable softmax over each destination row (dense-GTN
            # semantics: all N columns participate, matching the dense form)
            s = s - jnp.max(s, axis=-1, keepdims=True)
            ex = jnp.exp(s)
            s = ex * pl.reciprocal(jnp.sum(ex, axis=-1, keepdims=True), approx=True)
        out_ref[c] = s.astype(out_ref.dtype)


def gtconv(A_b, W, *, normalize):
    """A_b: (E, N, N) bf16, W: (C, E) f32 -> (C, N, N) bf16."""
    E, N, _ = A_b.shape
    C = W.shape[0]
    tm = _pick_tile(N, _ROW_TILE_PREFS)
    kernel = functools.partial(
        _gtconv_kernel, num_edge=E, num_channels=C, normalize=normalize)
    return pl.pallas_call(
        kernel,
        out_shape=jax.ShapeDtypeStruct((C, N, N), jnp.bfloat16),
        grid=(N // tm,),
        in_specs=[
            pl.BlockSpec(memory_space=pltpu.MemorySpace.SMEM),   # W (whole)
            pl.BlockSpec((E, tm, N), lambda i: (0, i, 0)),       # A row slab
        ],
        out_specs=pl.BlockSpec((C, tm, N), lambda i: (0, i, 0)),
        compiler_params=pltpu.CompilerParams(
            dimension_semantics=("parallel",),
            vmem_limit_bytes=VMEM_LIMIT),
    )(W, A_b)


# ----------------------------------------------------------------------------
# Kernel 2: channel-wise adjacency product, tiled (C, M, N, K).
#           bf16 operands, f32 VMEM accumulator (output is bf16, so the f32
#           scratch is kept rather than accumulating into o_ref directly).
# ----------------------------------------------------------------------------
def _chan_matmul_kernel(a_ref, b_ref, o_ref, acc_ref):
    @pl.when(pl.program_id(3) == 0)
    def _():
        acc_ref[...] = jnp.zeros_like(acc_ref)

    acc_ref[...] += jnp.dot(a_ref[0], b_ref[0],
                            preferred_element_type=jnp.float32)

    @pl.when(pl.program_id(3) == pl.num_programs(3) - 1)
    def _():
        o_ref[0] = acc_ref[...].astype(o_ref.dtype)


def channel_matmul(A, B):
    """A, B: (C, N, N) bf16 -> (C, N, N) bf16, per-channel matmul."""
    C, N, _ = A.shape
    tm = _pick_tile(N, _MM_TILE_PREFS)
    tn = _pick_tile(N, _MM_TILE_PREFS)
    tk = _pick_tile(N, _MM_K_PREFS)
    return pl.pallas_call(
        _chan_matmul_kernel,
        out_shape=jax.ShapeDtypeStruct((C, N, N), jnp.bfloat16),
        grid=(C, N // tm, N // tn, N // tk),
        in_specs=[
            pl.BlockSpec((1, tm, tk), lambda c, i, j, k: (c, i, k)),
            pl.BlockSpec((1, tk, tn), lambda c, i, j, k: (c, k, j)),
        ],
        out_specs=pl.BlockSpec((1, tm, tn), lambda c, i, j, k: (c, i, j)),
        scratch_shapes=[pltpu.VMEM((tm, tn), jnp.float32)],
        compiler_params=pltpu.CompilerParams(
            dimension_semantics=("parallel", "parallel", "parallel", "arbitrary"),
            vmem_limit_bytes=VMEM_LIMIT),
    )(A, B)


# ----------------------------------------------------------------------------
# Kernel 3: self-loop(=1) + EdgeWeightNorm('right') + GraphConv('none', relu)
#           reassociated form: relu( rownorm(M) @ (h @ Wg) + bg )
#           grid = (channel, hop, row-slab)
# ----------------------------------------------------------------------------
def _gcn_kernel(m_ref, hw_ref, bg_ref, out_ref, *, tm):
    i = pl.program_id(2)
    m = m_ref[0, 0].astype(jnp.float32)                   # (tm, N) row slab
    n = m.shape[1]
    # remove self-loops then add self-loops with weight 1  -> diag := 1
    row = jax.lax.broadcasted_iota(jnp.int32, (tm, n), 0)
    col = jax.lax.broadcasted_iota(jnp.int32, (tm, n), 1)
    m1 = jnp.where(col == row + i * tm, jnp.float32(1.0), m)
    # EdgeWeightNorm('right'): normalize incoming edges per destination row.
    # NOTE: like the PyTorch module, no eps guard (near-zero row sum blows up).
    mn = m1 * pl.reciprocal(jnp.sum(m1, axis=-1, keepdims=True), approx=True)
    # single full-depth MXU matmul against the pre-projected features h @ Wg
    out = jnp.dot(mn.astype(jnp.bfloat16), hw_ref[0],
                  preferred_element_type=jnp.float32)      # (tm, Dh)
    out = out + bg_ref[0]
    out_ref[0, 0] = jnp.maximum(out, 0.0)                  # relu


def gcn_all(M, hW, bg):
    """M: (C, J, N, N) bf16, hW: (C, N, Dh) bf16, bg: (C, 1, Dh) f32
       -> (C, J, N, Dh) f32."""
    C, J, N, _ = M.shape
    Dh = hW.shape[2]
    tm = _pick_tile(N, _ROW_TILE_PREFS)
    kernel = functools.partial(_gcn_kernel, tm=tm)
    return pl.pallas_call(
        kernel,
        out_shape=jax.ShapeDtypeStruct((C, J, N, Dh), jnp.float32),
        grid=(C, J, N // tm),
        in_specs=[
            pl.BlockSpec((1, 1, tm, N), lambda c, j, i: (c, j, i, 0)),
            pl.BlockSpec((1, N, Dh), lambda c, j, i: (c, 0, 0)),
            pl.BlockSpec((1, 1, Dh), lambda c, j, i: (c, 0, 0)),
        ],
        out_specs=pl.BlockSpec((1, 1, tm, Dh), lambda c, j, i: (c, j, i, 0)),
        compiler_params=pltpu.CompilerParams(
            dimension_semantics=("parallel", "parallel", "parallel"),
            vmem_limit_bytes=VMEM_LIMIT),
    )(M, hW, bg)


# ----------------------------------------------------------------------------
# HLHIA forward (glue in plain JAX, hot paths in the Pallas kernels above)
# ----------------------------------------------------------------------------
def hlhia_forward(A, h, conv1_ws, conv2_w0, gcn_w, gcn_b):
    """
    A        : (E, N, N) dense edge-type adjacencies (edge weights), f32
    h        : (N, in_dim) node features, f32
    conv1_ws : list of length num_layers, each (C, E)  - GTConv conv1 weights
    conv2_w0 : (C, E)                                   - GTConv conv2 (layer 0)
    gcn_w    : (C, in_dim, hidden)                      - per-channel GraphConv W
    gcn_b    : (C, 1, hidden)                           - per-channel GraphConv b
    returns  : (C, num_layers + 1, N, hidden) f32  == channel_attention_list
    """
    num_layers = len(conv1_ws)

    # A is a pure streamed operand of every mem-bound kernel -> ship as bf16
    A_b = A.astype(jnp.bfloat16)

    # --- layer 0 (HMAELayer, first=True) ---
    result_A = gtconv(A_b, conv1_ws[0], normalize=True)   # softmax_norm(conv1(A))
    result_B = gtconv(A_b, conv2_w0, normalize=True)      # softmax_norm(conv2(A))
    H = channel_matmul(result_A, result_B)                 # adj_product_graph
    layer_list = [result_A, H]

    # --- layers 1 .. L-1 (HMAELayer, first=False):
    #     un-normalized conv1(A) materialized cheaply, then per-channel product
    for l in range(1, num_layers):
        B = gtconv(A_b, conv1_ws[l], normalize=False)
        H = channel_matmul(H, B)
        layer_list.append(H)

    # --- Hop-level aggregation: per-channel GraphConv over every hop matrix ---
    M = jnp.stack(layer_list, axis=1)                       # (C, L+1, N, N) bf16
    # pre-project node features once per channel: hW[c] = h @ Wg[c]
    hW = jnp.einsum('nd,cdh->cnh', h, gcn_w).astype(jnp.bfloat16)   # (C, N, Dh)
    return gcn_all(M, hW, gcn_b)                             # (C, L+1, N, hidden)


if __name__ == "__main__":
    # small, module-consistent, lane-dense shapes (N and HIDDEN multiples of 128)
    E = 4         # num_edge_type
    C = 2         # num_channels
    L = 2         # num_layers
    N = 128       # number of nodes
    IN_DIM = 64
    HIDDEN = 128

    key = jax.random.PRNGKey(0)
    ks = jax.random.split(key, 8)

    # dense edge-weighted adjacencies and node features
    A = jax.random.uniform(ks[0], (E, N, N), dtype=jnp.float32)
    h = jax.random.normal(ks[1], (N, IN_DIM), dtype=jnp.float32)

    # GTConv weights: nn.init.normal_(std=0.01)
    conv1_ws = [0.01 * jax.random.normal(ks[2 + l], (C, E), dtype=jnp.float32)
                for l in range(L)]
    conv2_w0 = 0.01 * jax.random.normal(ks[4], (C, E), dtype=jnp.float32)

    # per-channel GraphConv params (glorot-ish init, zero bias)
    gcn_w = jax.random.normal(ks[5], (C, IN_DIM, HIDDEN), dtype=jnp.float32) / jnp.sqrt(
        jnp.float32(IN_DIM))
    gcn_b = jnp.zeros((C, 1, HIDDEN), dtype=jnp.float32)

    out = hlhia_forward(A, h, conv1_ws, conv2_w0, gcn_w, gcn_b)
    jax.block_until_ready(out)
    assert out.shape == (C, L + 1, N, HIDDEN)
    print("KERNEL_OK")
</pallas_src>

<mosaic_0001>
module attributes {stable_mosaic.version = 11 : i64} {
  func.func @_gtconv_kernel(%arg0: i32, %arg1: memref<2x4xf32, #tpu.memory_space<smem>>, %arg2: memref<4x128x128xbf16, #tpu.memory_space<vmem>>, %arg3: memref<2x128x128xbf16, #tpu.memory_space<vmem>>) attributes {dimension_semantics = [#tpu.dimension_semantics<parallel>], iteration_bounds = array<i64: 1>, scalar_prefetch = 0 : i64, scratch_operands = 0 : i64, tpu.core_type = #tpu.core_type<tc>, window_params = [{transform_indices = @transform_0, window_bounds = array<i64: 2, 4>}, {transform_indices = @transform_1, window_bounds = array<i64: 4, 128, 128>}, {transform_indices = @transform_2, window_bounds = array<i64: 2, 128, 128>}]} {
    %c0 = arith.constant 0 : index
    %c0_0 = arith.constant 0 : index
    %0 = memref.load %arg1[%c0, %c0_0] : memref<2x4xf32, #tpu.memory_space<smem>>
    %c0_1 = arith.constant 0 : index
    %c0_2 = arith.constant 0 : index
    %c0_3 = arith.constant 0 : index
    %1 = vector.load %arg2[%c0_1, %c0_2, %c0_3] : memref<4x128x128xbf16, #tpu.memory_space<vmem>>, vector<1x128x128xbf16>
    %2 = vector.shape_cast %1 : vector<1x128x128xbf16> to vector<128x128xbf16>
    %3 = arith.extf %2 : vector<128x128xbf16> to vector<128x128xf32>
    %4 = vector.broadcast %0 : f32 to vector<128x128xf32>
    %5 = arith.mulf %4, %3 : vector<128x128xf32>
    %c0_4 = arith.constant 0 : index
    %c1 = arith.constant 1 : index
    %6 = memref.load %arg1[%c0_4, %c1] : memref<2x4xf32, #tpu.memory_space<smem>>
    %c1_5 = arith.constant 1 : index
    %c0_6 = arith.constant 0 : index
    %c0_7 = arith.constant 0 : index
    %7 = vector.load %arg2[%c1_5, %c0_6, %c0_7] : memref<4x128x128xbf16, #tpu.memory_space<vmem>>, vector<1x128x128xbf16>
    %8 = vector.shape_cast %7 : vector<1x128x128xbf16> to vector<128x128xbf16>
    %9 = arith.extf %8 : vector<128x128xbf16> to vector<128x128xf32>
    %10 = vector.broadcast %6 : f32 to vector<128x128xf32>
    %11 = arith.mulf %10, %9 : vector<128x128xf32>
    %12 = arith.addf %5, %11 : vector<128x128xf32>
    %c0_8 = arith.constant 0 : index
    %c2 = arith.constant 2 : index
    %13 = memref.load %arg1[%c0_8, %c2] : memref<2x4xf32, #tpu.memory_space<smem>>
    %c2_9 = arith.constant 2 : index
    %c0_10 = arith.constant 0 : index
    %c0_11 = arith.constant 0 : index
    %14 = vector.load %arg2[%c2_9, %c0_10, %c0_11] : memref<4x128x128xbf16, #tpu.memory_space<vmem>>, vector<1x128x128xbf16>
    %15 = vector.shape_cast %14 : vector<1x128x128xbf16> to vector<128x128xbf16>
    %16 = arith.extf %15 : vector<128x128xbf16> to vector<128x128xf32>
    %17 = vector.broadcast %13 : f32 to vector<128x128xf32>
    %18 = arith.mulf %17, %16 : vector<128x128xf32>
    %19 = arith.addf %12, %18 : vector<128x128xf32>
    %c0_12 = arith.constant 0 : index
    %c3 = arith.constant 3 : index
    %20 = memref.load %arg1[%c0_12, %c3] : memref<2x4xf32, #tpu.memory_space<smem>>
    %c3_13 = arith.constant 3 : index
    %c0_14 = arith.constant 0 : index
    %c0_15 = arith.constant 0 : index
    %21 = vector.load %arg2[%c3_13, %c0_14, %c0_15] : memref<4x128x128xbf16, #tpu.memory_space<vmem>>, vector<1x128x128xbf16>
    %22 = vector.shape_cast %21 : vector<1x128x128xbf16> to vector<128x128xbf16>
    %23 = arith.extf %22 : vector<128x128xbf16> to vector<128x128xf32>
    %24 = vector.broadcast %20 : f32 to vector<128x128xf32>
    %25 = arith.mulf %24, %23 : vector<128x128xf32>
    %26 = arith.addf %19, %25 : vector<128x128xf32>
    %cst = arith.constant dense<0xFF800000> : vector<128xf32>
    %27 = vector.multi_reduction <maximumf>, %26, %cst [1] : vector<128x128xf32> to vector<128xf32>
    %28 = vector.shape_cast %27 : vector<128xf32> to vector<128x1xf32>
    %29 = vector.broadcast %28 : vector<128x1xf32> to vector<128x128xf32>
    %30 = arith.subf %26, %29 : vector<128x128xf32>
    %31 = math.exp %30 : vector<128x128xf32>
    %cst_16 = arith.constant dense<0.000000e+00> : vector<128xf32>
    %32 = vector.multi_reduction <add>, %31, %cst_16 [1] : vector<128x128xf32> to vector<128xf32>
    %33 = vector.shape_cast %32 : vector<128xf32> to vector<128x1xf32>
    %34 = tpu.reciprocal %33 {approx = true} : vector<128x1xf32> -> vector<128x1xf32>
    %35 = vector.broadcast %34 : vector<128x1xf32> to vector<128x128xf32>
    %36 = arith.mulf %31, %35 : vector<128x128xf32>
    %37 = arith.truncf %36 : vector<128x128xf32> to vector<128x128xbf16>
    %c0_17 = arith.constant 0 : index
    %c0_18 = arith.constant 0 : index
    %c0_19 = arith.constant 0 : index
    %38 = vector.load %arg3[%c0_17, %c0_18, %c0_19] : memref<2x128x128xbf16, #tpu.memory_space<vmem>>, vector<1x128x128xbf16>
    %39 = vector.shape_cast %38 : vector<1x128x128xbf16> to vector<128x128xbf16>
    %40 = vector.shape_cast %37 : vector<128x128xbf16> to vector<1x128x128xbf16>
    tpu.vector_store %arg3[%c0_17, %c0_18, %c0_19], %40 {strides = array<i32>} : memref<2x128x128xbf16, #tpu.memory_space<vmem>>, vector<1x128x128xbf16>,
    %c1_20 = arith.constant 1 : index
    %c0_21 = arith.constant 0 : index
    %41 = memref.load %arg1[%c1_20, %c0_21] : memref<2x4xf32, #tpu.memory_space<smem>>
    %c0_22 = arith.constant 0 : index
    %c0_23 = arith.constant 0 : index
    %c0_24 = arith.constant 0 : index
    %42 = vector.load %arg2[%c0_22, %c0_23, %c0_24] : memref<4x128x128xbf16, #tpu.memory_space<vmem>>, vector<1x128x128xbf16>
    %43 = vector.shape_cast %42 : vector<1x128x128xbf16> to vector<128x128xbf16>
    %44 = arith.extf %43 : vector<128x128xbf16> to vector<128x128xf32>
    %45 = vector.broadcast %41 : f32 to vector<128x128xf32>
    %46 = arith.mulf %45, %44 : vector<128x128xf32>
    %c1_25 = arith.constant 1 : index
    %c1_26 = arith.constant 1 : index
    %47 = memref.load %arg1[%c1_25, %c1_26] : memref<2x4xf32, #tpu.memory_space<smem>>
    %c1_27 = arith.constant 1 : index
    %c0_28 = arith.constant 0 : index
    %c0_29 = arith.constant 0 : index
    %48 = vector.load %arg2[%c1_27, %c0_28, %c0_29] : memref<4x128x128xbf16, #tpu.memory_space<vmem>>, vector<1x128x128xbf16>
    %49 = vector.shape_cast %48 : vector<1x128x128xbf16> to vector<128x128xbf16>
    %50 = arith.extf %49 : vector<128x128xbf16> to vector<128x128xf32>
    %51 = vector.broadcast %47 : f32 to vector<128x128xf32>
    %52 = arith.mulf %51, %50 : vector<128x128xf32>
    %53 = arith.addf %46, %52 : vector<128x128xf32>
    %c1_30 = arith.constant 1 : index
    %c2_31 = arith.constant 2 : index
    %54 = memref.load %arg1[%c1_30, %c2_31] : memref<2x4xf32, #tpu.memory_space<smem>>
    %c2_32 = arith.constant 2 : index
    %c0_33 = arith.constant 0 : index
    %c0_34 = arith.constant 0 : index
    %55 = vector.load %arg2[%c2_32, %c0_33, %c0_34] : memref<4x128x128xbf16, #tpu.memory_space<vmem>>, vector<1x128x128xbf16>
    %56 = vector.shape_cast %55 : vector<1x128x128xbf16> to vector<128x128xbf16>
    %57 = arith.extf %56 : vector<128x128xbf16> to vector<128x128xf32>
    %58 = vector.broadcast %54 : f32 to vector<128x128xf32>
    %59 = arith.mulf %58, %57 : vector<128x128xf32>
    %60 = arith.addf %53, %59 : vector<128x128xf32>
    %c1_35 = arith.constant 1 : index
    %c3_36 = arith.constant 3 : index
    %61 = memref.load %arg1[%c1_35, %c3_36] : memref<2x4xf32, #tpu.memory_space<smem>>
    %c3_37 = arith.constant 3 : index
    %c0_38 = arith.constant 0 : index
    %c0_39 = arith.constant 0 : index
    %62 = vector.load %arg2[%c3_37, %c0_38, %c0_39] : memref<4x128x128xbf16, #tpu.memory_space<vmem>>, vector<1x128x128xbf16>
    %63 = vector.shape_cast %62 : vector<1x128x128xbf16> to vector<128x128xbf16>
    %64 = arith.extf %63 : vector<128x128xbf16> to vector<128x128xf32>
    %65 = vector.broadcast %61 : f32 to vector<128x128xf32>
    %66 = arith.mulf %65, %64 : vector<128x128xf32>
    %67 = arith.addf %60, %66 : vector<128x128xf32>
    %cst_40 = arith.constant dense<0xFF800000> : vector<128xf32>
    %68 = vector.multi_reduction <maximumf>, %67, %cst_40 [1] : vector<128x128xf32> to vector<128xf32>
    %69 = vector.shape_cast %68 : vector<128xf32> to vector<128x1xf32>
    %70 = vector.broadcast %69 : vector<128x1xf32> to vector<128x128xf32>
    %71 = arith.subf %67, %70 : vector<128x128xf32>
    %72 = math.exp %71 : vector<128x128xf32>
    %cst_41 = arith.constant dense<0.000000e+00> : vector<128xf32>
    %73 = vector.multi_reduction <add>, %72, %cst_41 [1] : vector<128x128xf32> to vector<128xf32>
    %74 = vector.shape_cast %73 : vector<128xf32> to vector<128x1xf32>
    %75 = tpu.reciprocal %74 {approx = true} : vector<128x1xf32> -> vector<128x1xf32>
    %76 = vector.broadcast %75 : vector<128x1xf32> to vector<128x128xf32>
    %77 = arith.mulf %72, %76 : vector<128x128xf32>
    %78 = arith.truncf %77 : vector<128x128xf32> to vector<128x128xbf16>
    %c1_42 = arith.constant 1 : index
    %c0_43 = arith.constant 0 : index
    %c0_44 = arith.constant 0 : index
    %79 = vector.load %arg3[%c1_42, %c0_43, %c0_44] : memref<2x128x128xbf16, #tpu.memory_space<vmem>>, vector<1x128x128xbf16>
    %80 = vector.shape_cast %79 : vector<1x128x128xbf16> to vector<128x128xbf16>
    %81 = vector.shape_cast %78 : vector<128x128xbf16> to vector<1x128x128xbf16>
    tpu.vector_store %arg3[%c1_42, %c0_43, %c0_44], %81 {strides = array<i32>} : memref<2x128x128xbf16, #tpu.memory_space<vmem>>, vector<1x128x128xbf16>,
    return
  }
  func.func @transform_0(%arg0: i32) -> (i32, i32) {
    %c0_i32 = arith.constant 0 : i32
    %c0_i32_0 = arith.constant 0 : i32
    %c0_i32_1 = arith.constant 0 : i32
    return %c0_i32, %c0_i32_0 : i32, i32
  }
  func.func @transform_1(%arg0: i32) -> (i32, i32, i32) {
    %c0_i32 = arith.constant 0 : i32
    %c0_i32_0 = arith.constant 0 : i32
    %c0_i32_1 = arith.constant 0 : i32
    return %c0_i32, %arg0, %c0_i32_0 : i32, i32, i32
  }
  func.func @transform_2(%arg0: i32) -> (i32, i32, i32) {
    %c0_i32 = arith.constant 0 : i32
    %c0_i32_0 = arith.constant 0 : i32
    %c0_i32_1 = arith.constant 0 : i32
    return %c0_i32, %arg0, %c0_i32_0 : i32, i32, i32
  }
}

</mosaic_0001>

<bundles_post_ra>
// kernel: tpu_custom_call.1
= control target key start
LH: loop header
LB: loop body
LE: loop exit
PB: predicated region body
PF: predicated region fallthrough
CT: control target
= control target key end

     0   :  { %7 = vsyncpa [#allocation5], 0  ;;  %s2543_s0 = inlined_call_operand.hbm [shape: f32[2,4], index: 0, kind: input, shape index: {}]   ;;  %s2544_s1 = inlined_call_operand.hbm [shape: bf16[4,128,128], index: 1, kind: input, shape index: {}]   ;;  %s2545_s2 = inlined_call_operand.hbm [shape: bf16[2,128,128], index: 2, kind: output, shape index: {}]  }
   0x1   :  { %8 = vsyncpa [#allocation3], 0 }
   0x2   :  { %9 = vsyncpa [#allocation4], 0  ;;  %s1613_s11 = scalar_lea.hbm %s2543_s0, 32 }
   0x3   :  { %p1614_p0 = scmp.ne.s32.totalorder %s2543_s0, %s1613_s11  ;;  %p1617_p1 = scmp.lt.u32.totalorder %s1613_s11, %s2543_s0 }
   0x5   :  { %p1619_p2 = pnand %p1617_p1, %p1614_p0 }
   0x7   :  { %1622 = shalt.err (!%p1619_p2)
}
   0x8   :  { %s1673_s16 = smov [#allocation2]   ;;  %s1674_s19 = smov [#allocation6]  }
   0x9   :  { %17 = dma.hbm_to_smem %s2543_s0, 32, %s1673_s16, [#allocation5]  }
   0xa   :  { %s23_s20 = sshll.u32 %s1674_s19, 4  ;;  %s1623_s23 = scalar_lea.hbm %s2544_s1, 4096  ;;  %s24_s20 = int_to_ptr.vmem [resolvable:$true] %s23_s20 }
   0xb   :  { %p1624_p3 = scmp.ne.s32.totalorder %s2544_s1, %s1623_s23  ;;  %p1627_p4 = scmp.lt.u32.totalorder %s1623_s23, %s2544_s1 }
   0xd   :  { %p1629_p5 = pnand %p1627_p4, %p1624_p3 }
   0xf   :  { %1632 = shalt.err (!%p1629_p5)
}
  0x10   :  { %s1633_s28 = scalar_lea.vmem %s24_s20, 4096  ;;  %p1638_p7 = scmp.lt.s32.totalorder %s24_s20, %s24_s20 }
  0x11   :  { %p1634_p6 = scmp.ne.s32.totalorder %s24_s20, %s1633_s28  ;;  %p1639_p8 = scmp.lt.s32.totalorder %s1633_s28, %s1633_s28 }
  0x13   :  { %p1640_p9 = por %p1639_p8, %p1638_p7 }
  0x15   :  { %p1641_p10 = pnand %p1640_p9, %p1634_p6 }
  0x17   :  { %1644 = shalt.err (!%p1641_p10)
}
  0x18   :  { %s1675_s0 = smov 64   ;;  %s1676_s29 = smov 4  }
  0x19   :  { %29 = dma.hbm_to_vmem [thread:$0]  %s2544_s1, 4096, %s24_s20, [#allocation3], %s1675_s0, %s1675_s0, %s1676_s29  }
  0x1a   :  { %1667 = dma.done.wait [#allocation5], 32  }
  0x1b   :  { %1668 = vsyncadd [#allocation5], 4294967264 }
  0x1c   :  { %1669 = dma.done.wait [#allocation3], 4096  }
  0x1d   :  { %1670 = vsyncadd [#allocation3], 4294963200 }
  0x1e   :  { %36 = sfence }
  0x1f   :  { %s1720_s4 = sld [smem:[#allocation2]]  ;;  %v1722_v0 = vld [vmem:[#allocation6] sm:$0xff]   ;;  %s1724_s5 = sld [smem:[#allocation2 + $0x1]]  ;;  %v1742_v10 = vld [vmem:[#allocation6 + $0x8] sm:$0xff]   ;;  %v1756_v20 = vld [vmem:[#allocation6 + $0x10] sm:$0xff]  }
  0x20   :  { %v1726_v1 = vld [vmem:[#allocation6 + $0x40] sm:$0xff]   ;;  %v2599_v2 = vunpack.c.l.bf16 %v1722_v0  ;;  %s1730_s6 = sld [smem:[#allocation2 + $0x2]]  ;;  %s1734_s1 = sld [smem:[#allocation2 + $0x3]]  ;;  %v2594_v6 = vunpack.c.h.bf16 %v1722_v0  ;;  %v1744_v11 = vld [vmem:[#allocation6 + $0x48] sm:$0xff]   ;;  %v2580_v15 = vunpack.c.l.bf16 %v1742_v10  ;;  %v2570_v19 = vunpack.c.h.bf16 %v1742_v10  ;;  %v1758_v21 = vld [vmem:[#allocation6 + $0x50] sm:$0xff]  }
  0x21   :  { %v2595_v3 = vunpack.c.l.bf16 %v1726_v1  ;;  %v1732_v4 = vld [vmem:[#allocation6 + $0x80] sm:$0xff]   ;;  %v2591_v7 = vunpack.c.h.bf16 %v1726_v1  ;;  %v1746_v12 = vld [vmem:[#allocation6 + $0x88] sm:$0xff]   ;;  %v2578_v16 = vunpack.c.l.bf16 %v1744_v11  ;;  %v2568_v23 = vunpack.c.h.bf16 %v1744_v11  ;;  %v1764_v26 = vld [vmem:[#allocation6 + $0x90] sm:$0xff]   ;;  %s2041_s7 = sld [smem:[#allocation2 + $0x80]]  ;;  %s2043_s8 = sld [smem:[#allocation2 + $0x81]] }
  0x22   :  { %v1736_v5 = vld [vmem:[#allocation6 + $0xc0] sm:$0xff]   ;;  %v2593_v8 = vunpack.c.l.bf16 %v1732_v4  ;;  %v2585_v13 = vunpack.c.h.bf16 %v1732_v4  ;;  %v2577_v17 = vunpack.c.l.bf16 %v1746_v12  ;;  %v1753_v18 = vld [vmem:[#allocation6 + $0xc8] sm:$0xff]   ;;  %v2567_v24 = vunpack.c.h.bf16 %v1746_v12  ;;  %v1766_v27 = vld [vmem:[#allocation6 + $0xd0] sm:$0xff]   ;;  %s2062_s9 = sld [smem:[#allocation2 + $0x82]]  ;;  %s2064_s10 = sld [smem:[#allocation2 + $0x83]] }
  0x23   :  { %v2592_v9 = vunpack.c.l.bf16 %v1736_v5  ;;  %v2584_v14 = vunpack.c.h.bf16 %v1736_v5  ;;  %v2572_v22 = vunpack.c.l.bf16 %v1753_v18  ;;  %v2563_v25 = vunpack.c.h.bf16 %v1753_v18  ;;  %s1677_s11 = smov [#allocation7]  }
  0x24   :  { %v2562_v28 = vunpack.c.l.bf16 %v1756_v20  ;;  %v2560_v29 = vunpack.c.l.bf16 %v1758_v21  ;;  %v2558_v30 = vunpack.c.l.bf16 %v1764_v26  ;;  %v2557_v31 = vunpack.c.l.bf16 %v1766_v27  ;;  %s990_s12 = sshll.u32 %s1677_s11, 4  ;;  %s991_s12 = int_to_ptr.vmem [resolvable:$true] %s990_s12 }
  0x25   :  { %v1773_v32 = vstv %s1720_s4  ;;  %v1776_v33 = vstv %s1724_s5  ;;  %v2555_v34 = vunpack.c.h.bf16 %v1756_v20  ;;  %v2551_v35 = vunpack.c.h.bf16 %v1758_v21  ;;  %s1645_s13 = scalar_lea.vmem %s991_s12, 2048  ;;  %p1650_p12 = scmp.lt.s32.totalorder %s991_s12, %s991_s12 }
  0x26   :  { %v71_v36 = vmul.f32 %v2599_v2, %v1773_v32  ;;  %v122_v37 = vmul.f32 %v2595_v3, %v1776_v33  ;;  %v1787_v38 = vstv %s1730_s6  ;;  %v1790_v39 = vstv %s1734_s1  ;;  %p1646_p11 = scmp.ne.s32.totalorder %s991_s12, %s1645_s13  ;;  %p1651_p13 = scmp.lt.s32.totalorder %s1645_s13, %s1645_s13 }
  0x27   :  { %v189_v40 = vmul.f32 %v2593_v8, %v1787_v38  ;;  %v256_v41 = vmul.f32 %v2592_v9, %v1790_v39  ;;  %v73_v42 = vmul.f32 %v2580_v15, %v1773_v32  ;;  %v124_v43 = vmul.f32 %v2578_v16, %v1776_v33  ;;  %v1994_v16 = vld [vmem:[#allocation6 + $0xb0] sm:$0xff]  }
  0x28   :  { %v138_v44 = vadd.f32 %v122_v37, %v71_v36  ;;  %v191_v45 = vmul.f32 %v2577_v17, %v1787_v38  ;;  %v258_v46 = vmul.f32 %v2572_v22, %v1790_v39  ;;  %v72_v47 = vmul.f32 %v2594_v6, %v1773_v32  ;;  %v1845_v36 = vld [vmem:[#allocation6 + $0x18] sm:$0xff]   ;;  %v1992_v17 = vld [vmem:[#allocation6 + $0x70] sm:$0xff]   ;;  %p1652_p0 = por %p1651_p13, %p1650_p12 }
  0x29   :  { %v140_v48 = vadd.f32 %v124_v43, %v73_v42  ;;  %v123_v49 = vmul.f32 %v2591_v7, %v1776_v33  ;;  %v190_v50 = vmul.f32 %v2585_v13, %v1787_v38  ;;  %v257_v51 = vmul.f32 %v2584_v14, %v1790_v39  ;;  %v1847_v37 = vld [vmem:[#allocation6 + $0x58] sm:$0xff]  }
  0x2a   :  { %v205_v52 = vadd.f32 %v189_v40, %v138_v44  ;;  %v74_v53 = vmul.f32 %v2570_v19, %v1773_v32  ;;  %v125_v54 = vmul.f32 %v2568_v23, %v1776_v33  ;;  %v192_v55 = vmul.f32 %v2567_v24, %v1787_v38  ;;  %v2054_v7 = vld [vmem:[#allocation6 + $0xf8] sm:$0xff]   ;;  %p1653_p1 = pnand %p1652_p0, %p1646_p11 }
  0x2b   :  { %v207_v56 = vadd.f32 %v191_v45, %v140_v48  ;;  %v139_v57 = vadd.f32 %v123_v49, %v72_v47  ;;  %v259_v58 = vmul.f32 %v2563_v25, %v1790_v39  ;;  %v75_v59 = vmul.f32 %v2562_v28, %v1773_v32  ;;  %v1862_v48 = vld [vmem:[#allocation6 + $0x98] sm:$0xff]  }
  0x2c   :  { %v1837_v60 = vadd.f32 %v256_v41, %v205_v52  ;;  %v141_v61 = vadd.f32 %v125_v54, %v74_v53  ;;  %v126_v62 = vmul.f32 %v2560_v29, %v1776_v33  ;;  %v193_v63 = vmul.f32 %v2558_v30, %v1787_v38  ;;  %v1870_v54 = vld [vmem:[#allocation6 + $0xd8] sm:$0xff]   ;;  %v1936_v30 = vld [vmem:[#allocation6 + $0x28] sm:$0xff]  }
  0x2d   :  { %v1849_v40 = vadd.f32 %v258_v46, %v207_v56  ;;  %v206_v42 = vadd.f32 %v190_v50, %v139_v57  ;;  %v260_v41 = vmul.f32 %v2557_v31, %v1790_v39  ;;  %v76_v43 = vmul.f32 %v2555_v34, %v1773_v32 }
  0x2e   :  { %288 = vmax.xlane.f32.xlu0 %v1837_v60  ;;  %v208_v44 = vadd.f32 %v192_v55, %v141_v61  ;;  %v142_v45 = vadd.f32 %v126_v62, %v75_v59  ;;  %v127_v47 = vmul.f32 %v2551_v35, %v1776_v33  ;;  %v2550_v46 = vunpack.c.h.bf16 %v1764_v26 }
  0x2f   :  { %292 = vmax.xlane.f32.xlu1 %v1849_v40  ;;  %v1865_v49 = vadd.f32 %v257_v51, %v206_v42  ;;  %v2548_v50 = vunpack.c.h.bf16 %v1766_v27  ;;  %v2547_v52 = vunpack.c.l.bf16 %v1845_v36  ;;  %v2546_v53 = vunpack.c.l.bf16 %v1847_v37 }
  0x30   :  { %v1872_v55 = vadd.f32 %v259_v58, %v208_v44  ;;  %v209_v56 = vadd.f32 %v193_v63, %v142_v45  ;;  %v143_v57 = vadd.f32 %v127_v47, %v76_v43  ;;  %v194_v59 = vmul.f32 %v2550_v46, %v1787_v38  ;;  %v1892_v45 = vld [vmem:[#allocation6 + $0x20] sm:$0xff]  }
  0x31   :  { %v261_v51 = vmul.f32 %v2548_v50, %v1790_v39  ;;  %v77_v61 = vmul.f32 %v2547_v52, %v1773_v32  ;;  %v128_v62 = vmul.f32 %v2546_v53, %v1776_v33  ;;  %v2549_v58 = vunpack.c.l.bf16 %v1862_v48 }
  0x32   :  { %290 = vmax.xlane.f32.xlu0 %v1865_v49  ;;  %v1888_v63 = vadd.f32 %v260_v41, %v209_v56  ;;  %v210_v42 = vadd.f32 %v194_v59, %v143_v57  ;;  %v2552_v43 = vunpack.c.l.bf16 %v1870_v54  ;;  %v2553_v44 = vunpack.c.h.bf16 %v1845_v36  ;;  %v1900_v41 = vld [vmem:[#allocation6 + $0x60] sm:$0xff]  }
  0x33   :  { %294 = vmax.xlane.f32.xlu1 %v1872_v55  ;;  %v144_v47 = vadd.f32 %v128_v62, %v77_v61  ;;  %v195_v53 = vmul.f32 %v2549_v58, %v1787_v38  ;;  %v2554_v52 = vunpack.c.h.bf16 %v1847_v37  ;;  %v2556_v50 = vunpack.c.h.bf16 %v1862_v48  ;;  %v1902_v56 = vld [vmem:[#allocation6 + $0xa0] sm:$0xff]  }
  0x34   :  { %v1904_v57 = vld [vmem:[#allocation6 + $0xe0] sm:$0xff]   ;;  %v1906_v59 = vadd.f32 %v261_v51, %v210_v42  ;;  %v262_v61 = vmul.f32 %v2552_v43, %v1790_v39  ;;  %v78_v62 = vmul.f32 %v2553_v44, %v1773_v32  ;;  %v2559_v58 = vunpack.c.h.bf16 %v1870_v54 }
  0x35   :  { %v211_v46 = vadd.f32 %v195_v53, %v144_v47  ;;  %v129_v35 = vmul.f32 %v2554_v52, %v1776_v33  ;;  %v196_v51 = vmul.f32 %v2556_v50, %v1787_v38  ;;  %v2561_v42 = vunpack.c.l.bf16 %v1892_v45 }
  0x36   :  { %296 = vmax.xlane.f32.xlu0 %v1888_v63  ;;  %v263_v43 = vmul.f32 %v2559_v58, %v1790_v39  ;;  %v2564_v44 = vunpack.c.l.bf16 %v1900_v41  ;;  %v2565_v53 = vunpack.c.l.bf16 %v1902_v56  ;;  %v2566_v47 = vunpack.c.l.bf16 %v1904_v57  ;;  %v1938_v58 = vld [vmem:[#allocation6 + $0x68] sm:$0xff]  }
  0x37   :  { %298 = vmax.xlane.f32.xlu1 %v1906_v59  ;;  %v1930_v52 = vadd.f32 %v262_v61, %v211_v46  ;;  %v145_v34 = vadd.f32 %v129_v35, %v78_v62  ;;  %v79_v50 = vmul.f32 %v2561_v42, %v1773_v32  ;;  %v2569_v31 = vunpack.c.h.bf16 %v1892_v45  ;;  %v1950_v62 = vld [vmem:[#allocation6 + $0xa8] sm:$0xff]  }
  0x38   :  { %v130_v29 = vmul.f32 %v2564_v44, %v1776_v33  ;;  %v197_v46 = vmul.f32 %v2565_v53, %v1787_v38  ;;  %v264_v35 = vmul.f32 %v2566_v47, %v1790_v39  ;;  %v2571_v61 = vunpack.c.h.bf16 %v1900_v41 }
  0x39   :  { %v212_v42 = vadd.f32 %v196_v51, %v145_v34  ;;  %v80_v28 = vmul.f32 %v2569_v31, %v1773_v32  ;;  %v2574_v25 = vunpack.c.h.bf16 %v1902_v56  ;;  %v2573_v44 = vunpack.c.h.bf16 %v1904_v57  ;;  %v1963_v34 = vld [vmem:[#allocation6 + $0xe8] sm:$0xff]  }
  0x3a   :  { %300 = vmax.xlane.f32.xlu0 %v1930_v52  ;;  %v146_v53 = vadd.f32 %v130_v29, %v79_v50  ;;  %v131_v47 = vmul.f32 %v2571_v61, %v1776_v33  ;;  %v2575_v24 = vunpack.c.l.bf16 %v1936_v30  ;;  %v2576_v23 = vunpack.c.l.bf16 %v1938_v58 }
  0x3b   :  { %v1965_v51 = vadd.f32 %v263_v43, %v212_v42  ;;  %v198_v31 = vmul.f32 %v2574_v25, %v1787_v38  ;;  %v265_v29 = vmul.f32 %v2573_v44, %v1790_v39  ;;  %v2579_v50 = vunpack.c.l.bf16 %v1950_v62 }
  0x3c   :  { %v213_v19 = vadd.f32 %v197_v46, %v146_v53  ;;  %v147_v61 = vadd.f32 %v131_v47, %v80_v28  ;;  %v81_v22 = vmul.f32 %v2575_v24, %v1773_v32  ;;  %v132_v43 = vmul.f32 %v2576_v23, %v1776_v33  ;;  %v1987_v53 = vld [vmem:[#allocation6 + $0x30] sm:$0xff]  }
  0x3d   :  { %302 = vmax.xlane.f32.xlu1 %v1965_v51  ;;  %v199_v42 = vmul.f32 %v2579_v50, %v1787_v38  ;;  %v2581_v44 = vunpack.c.l.bf16 %v1963_v34  ;;  %v2582_v25 = vunpack.c.h.bf16 %v1936_v30  ;;  %v2583_v28 = vunpack.c.h.bf16 %v1938_v58 }
  0x3e   :  { %v1989_v47 = vadd.f32 %v264_v35, %v213_v19  ;;  %v214_v46 = vadd.f32 %v198_v31, %v147_v61  ;;  %v148_v24 = vadd.f32 %v132_v43, %v81_v22  ;;  %v2587_v23 = vunpack.c.h.bf16 %v1950_v62  ;;  %v2006_v31 = vld [vmem:[#allocation6 + $0xf0] sm:$0xff]  }
  0x3f   :  { %v266_v50 = vmul.f32 %v2581_v44, %v1790_v39  ;;  %v82_v15 = vmul.f32 %v2582_v25, %v1773_v32  ;;  %v133_v19 = vmul.f32 %v2583_v28, %v1776_v33  ;;  %v2586_v22 = vunpack.c.h.bf16 %v1963_v34 }
  0x40   :  { %304 = vmax.xlane.f32.xlu0 %v1989_v47  ;;  %v2009_v35 = vadd.f32 %v265_v29, %v214_v46  ;;  %v215_v61 = vadd.f32 %v199_v42, %v148_v24  ;;  %v200_v43 = vmul.f32 %v2587_v23, %v1787_v38  ;;  %v2588_v44 = vunpack.c.l.bf16 %v1987_v53  ;;  %v2028_v46 = vld [vmem:[#allocation6 + $0x38] sm:$0xff]  }
  0x41   :  { %v149_v25 = vadd.f32 %v133_v19, %v82_v15  ;;  %v267_v28 = vmul.f32 %v2586_v22, %v1790_v39  ;;  %v2590_v14 = vunpack.c.l.bf16 %v1992_v17  ;;  %v2589_v13 = vunpack.c.l.bf16 %v1994_v16  ;;  %v2037_v23 = vld [vmem:[#allocation6 + $0x78] sm:$0xff]  }
  0x42   :  { %306 = vmax.xlane.f32.xlu1 %v2009_v35  ;;  %v2021_v29 = vadd.f32 %v266_v50, %v215_v61  ;;  %v83_v24 = vmul.f32 %v2588_v44, %v1773_v32  ;;  %v2596_v42 = vunpack.c.l.bf16 %v2006_v31  ;;  %v2598_v15 = vunpack.c.h.bf16 %v1987_v53  ;;  %v2039_v44 = vld [vmem:[#allocation6 + $0xb8] sm:$0xff]  }
  0x43   :  { %v216_v19 = vadd.f32 %v200_v43, %v149_v25  ;;  %v134_v22 = vmul.f32 %v2590_v14, %v1776_v33  ;;  %v201_v50 = vmul.f32 %v2589_v13, %v1787_v38  ;;  %v2597_v61 = vunpack.c.h.bf16 %v1992_v17 }
  0x44   :  { %2614 = vst [vmem:[#allocation11_spill] sm:$0xff] %v2021_v29  ;;  %308 = vmax.xlane.f32.xlu0 %v2021_v29  ;;  %v268_v25 = vmul.f32 %v2596_v42, %v1790_v39  ;;  %v84_v43 = vmul.f32 %v2598_v15, %v1773_v32  ;;  %v2600_v13 = vunpack.c.h.bf16 %v1994_v16  ;;  %v2601_v14 = vunpack.c.h.bf16 %v2006_v31 }
  0x45   :  { %v2056_v9 = vadd.f32 %v267_v28, %v216_v19  ;;  %v150_v8 = vadd.f32 %v134_v22, %v83_v24  ;;  %v135_v6 = vmul.f32 %v2597_v61, %v1776_v33  ;;  %v2603_v3 = vunpack.c.l.bf16 %v2028_v46 }
  0x46   :  { %v202_v42 = vmul.f32 %v2600_v13, %v1787_v38  ;;  %v269_v28 = vmul.f32 %v2601_v14, %v1790_v39  ;;  %v2604_v22 = vunpack.c.l.bf16 %v2037_v23  ;;  %v2605_v24 = vunpack.c.l.bf16 %v2039_v44 }
  0x47   :  { %2615 = vst [vmem:[#allocation12_spill] sm:$0xff] %v2056_v9  ;;  %310 = vmax.xlane.f32.xlu1 %v2056_v9  ;;  %v217_v19 = vadd.f32 %v201_v50, %v150_v8  ;;  %v151_v61 = vadd.f32 %v135_v6, %v84_v43  ;;  %v85_v15 = vmul.f32 %v2603_v3, %v1773_v32  ;;  %v2607_v2 = vunpack.c.l.bf16 %v2054_v7 }
  0x48   :  { %v136_v13 = vmul.f32 %v2604_v22, %v1776_v33  ;;  %v203_v14 = vmul.f32 %v2605_v24, %v1787_v38  ;;  %v2611_v9 = vunpack.c.h.bf16 %v2028_v46  ;;  %v2608_v6 = vunpack.c.h.bf16 %v2037_v23 }
  0x49   :  { %v2087_v8 = vadd.f32 %v268_v25, %v217_v19  ;;  %v218_v50 = vadd.f32 %v202_v42, %v151_v61  ;;  %v270_v43 = vmul.f32 %v2607_v2, %v1790_v39  ;;  %v2609_v3 = vunpack.c.h.bf16 %v2039_v44 }
  0x4a   :  { %v152_v22 = vadd.f32 %v136_v13, %v85_v15  ;;  %v86_v24 = vmul.f32 %v2611_v9, %v1773_v32  ;;  %v137_v29 = vmul.f32 %v2608_v6, %v1776_v33  ;;  %v2610_v25 = vunpack.c.h.bf16 %v2054_v7 }
  0x4b   :  { %2616 = vst [vmem:[#allocation13_spill] sm:$0xff] %v2087_v8  ;;  %312 = vmax.xlane.f32.xlu0 %v2087_v8  ;;  %v2101_v42 = vadd.f32 %v269_v28, %v218_v50  ;;  %v204_v61 = vmul.f32 %v2609_v3, %v1787_v38  ;;  %v2107_v13 = vstv %s2041_s7  ;;  %v2110_v15 = vstv %s2043_s8 }
  0x4c   :  { %v219_v19 = vadd.f32 %v203_v14, %v152_v22  ;;  %v153_v32 = vadd.f32 %v137_v29, %v86_v24  ;;  %v271_v33 = vmul.f32 %v2610_v25, %v1790_v39  ;;  %v2618_v2 = vunpack.c.l.bf16 %v1722_v0 }
  0x4d   :  { %2617 = vst [vmem:[#allocation14_spill] sm:$0xff] %v2101_v42  ;;  %314 = vmax.xlane.f32.xlu1 %v2101_v42  ;;  %v2619_v28 = vunpack.c.l.bf16 %v1726_v1  ;;  %v2123_v50 = vstv %s2062_s9  ;;  %v2126_v3 = vstv %s2064_s10  ;;  %v2620_v14 = vunpack.c.h.bf16 %v1722_v0 }
  0x4e   :  { %v546_v6 = vmul.f32 %v2618_v2, %v2107_v13  ;;  %v2131_v22 = vadd.f32 %v270_v43, %v219_v19  ;;  %v220_v39 = vadd.f32 %v204_v61, %v153_v32  ;;  %v2621_v2 = vunpack.c.l.bf16 %v1732_v4 }
  0x4f   :  { %v596_v38 = vmul.f32 %v2619_v28, %v2110_v15  ;;  %v547_v29 = vmul.f32 %v2620_v14, %v2107_v13  ;;  %v2622_v25 = vunpack.c.l.bf16 %v1736_v5  ;;  %v2623_v42 = vunpack.c.h.bf16 %v1726_v1 }
  0x50   :  { %v662_v24 = vmul.f32 %v2621_v2, %v2123_v50  ;;  %v2624_v0 = vunpack.c.h.bf16 %v1732_v4  ;;  %v2625_v43 = vunpack.c.h.bf16 %v1736_v5  ;;  %316 = vmax.xlane.f32.xlu0 %v2131_v22  ;;  %v2149_v19 = vadd.f32 %v271_v33, %v220_v39 }
  0x51   :  { %v728_v9 = vmul.f32 %v2622_v25, %v2126_v3  ;;  %v612_v28 = vadd.f32 %v596_v38, %v546_v6  ;;  %v597_v8 = vmul.f32 %v2623_v42, %v2110_v15  ;;  %v2626_v25 = vunpack.c.l.bf16 %v1742_v10 }
  0x52   :  { %v663_v14 = vmul.f32 %v2624_v0, %v2123_v50  ;;  %v729_v61 = vmul.f32 %v2625_v43, %v2126_v3  ;;  %v2627_v1 = vunpack.c.l.bf16 %v1744_v11  ;;  %v2628_v4 = vunpack.c.l.bf16 %v1746_v12  ;;  %318 = vmax.xlane.f32.xlu1 %v2149_v19 }
  0x53   :  { %v548_v6 = vmul.f32 %v2626_v25, %v2107_v13  ;;  %v678_v38 = vadd.f32 %v662_v24, %v612_v28  ;;  %v613_v2 = vadd.f32 %v597_v8, %v547_v29  ;;  %v2629_v5 = vunpack.c.l.bf16 %v1753_v18 }
  0x54   :  { %v598_v42 = vmul.f32 %v2627_v1, %v2110_v15  ;;  %v664_v32 = vmul.f32 %v2628_v4, %v2123_v50  ;;  %v2630_v33 = vunpack.c.h.bf16 %v1742_v10  ;;  %v2631_v25 = vunpack.c.h.bf16 %v1744_v11 }
  0x55   :  { %v730_v0 = vmul.f32 %v2629_v5, %v2126_v3  ;;  %v2632_v4 = vunpack.c.h.bf16 %v1746_v12  ;;  %v2633_v8 = vunpack.c.h.bf16 %v1753_v18  ;;  %v2176_v28 = vadd.f32 %v728_v9, %v678_v38 }
  0x56   :  { %v549_v39 = vmul.f32 %v2630_v33, %v2107_v13  ;;  %v614_v43 = vadd.f32 %v598_v42, %v548_v6  ;;  %v599_v1 = vmul.f32 %v2631_v25, %v2110_v15  ;;  %v679_v5 = vadd.f32 %v663_v14, %v613_v2 }
  0x57   :  { %v665_v24 = vmul.f32 %v2632_v4, %v2123_v50  ;;  %v731_v29 = vmul.f32 %v2633_v8, %v2126_v3  ;;  %v2634_v10 = vunpack.c.l.bf16 %v1756_v20  ;;  %v2635_v6 = vunpack.c.l.bf16 %v1758_v21  ;;  %760 = vmax.xlane.f32.xlu0 %v2176_v28 }
  0x58   :  { %v680_v42 = vadd.f32 %v664_v32, %v614_v43  ;;  %v615_v25 = vadd.f32 %v599_v1, %v549_v39  ;;  %v2636_v12 = vunpack.c.l.bf16 %v1764_v26  ;;  %v2637_v18 = vunpack.c.l.bf16 %v1766_v27 }
  0x59   :  { %v550_v33 = vmul.f32 %v2634_v10, %v2107_v13  ;;  %v600_v11 = vmul.f32 %v2635_v6, %v2110_v15  ;;  %v2191_v14 = vadd.f32 %v729_v61, %v679_v5  ;;  %v2638_v2 = vunpack.c.h.bf16 %v1756_v20 }
  0x5a   :  { %v666_v4 = vmul.f32 %v2636_v12, %v2123_v50  ;;  %v732_v9 = vmul.f32 %v2637_v18, %v2126_v3  ;;  %v2639_v32 = vunpack.c.h.bf16 %v1758_v21  ;;  %v2199_v43 = vadd.f32 %v730_v0, %v680_v42 }
  0x5b   :  { %v616_v38 = vadd.f32 %v600_v11, %v550_v33  ;;  %v551_v8 = vmul.f32 %v2638_v2, %v2107_v13  ;;  %v681_v1 = vadd.f32 %v665_v24, %v615_v25  ;;  %v2640_v10 = vunpack.c.h.bf16 %v1764_v26  ;;  %762 = vmax.xlane.f32.xlu1 %v2191_v14 }
  0x5c   :  { %v601_v39 = vmul.f32 %v2639_v32, %v2110_v15  ;;  %v2641_v61 = vunpack.c.h.bf16 %v1766_v27  ;;  %v2642_v11 = vunpack.c.l.bf16 %v1845_v36  ;;  %v2643_v0 = vunpack.c.l.bf16 %v1847_v37  ;;  %764 = vmax.xlane.f32.xlu0 %v2199_v43 }
  0x5d   :  { %v667_v6 = vmul.f32 %v2640_v10, %v2123_v50  ;;  %v682_v33 = vadd.f32 %v666_v4, %v616_v38  ;;  %v2214_v42 = vadd.f32 %v731_v29, %v681_v1  ;;  %v2644_v26 = vunpack.c.l.bf16 %v1862_v48 }
  0x5e   :  { %v733_v5 = vmul.f32 %v2641_v61, %v2126_v3  ;;  %v617_v20 = vadd.f32 %v601_v39, %v551_v8  ;;  %v552_v21 = vmul.f32 %v2642_v11, %v2107_v13  ;;  %v602_v24 = vmul.f32 %v2643_v0, %v2110_v15 }
  0x5f   :  { %v668_v25 = vmul.f32 %v2644_v26, %v2123_v50  ;;  %v2645_v27 = vunpack.c.l.bf16 %v1870_v54  ;;  %v2646_v4 = vunpack.c.h.bf16 %v1845_v36  ;;  %v2226_v38 = vadd.f32 %v732_v9, %v682_v33  ;;  %766 = vmax.xlane.f32.xlu1 %v2214_v42 }
  0x60   :  { %v683_v2 = vadd.f32 %v667_v6, %v617_v20  ;;  %v618_v8 = vadd.f32 %v602_v24, %v552_v21  ;;  %v2647_v29 = vunpack.c.h.bf16 %v1847_v37  ;;  %v2648_v39 = vunpack.c.h.bf16 %v1862_v48 }
  0x61   :  { %v734_v12 = vmul.f32 %v2645_v27, %v2126_v3  ;;  %v553_v18 = vmul.f32 %v2646_v4, %v2107_v13  ;;  %v2649_v10 = vunpack.c.h.bf16 %v1870_v54  ;;  %v2650_v36 = vunpack.c.l.bf16 %v1892_v45  ;;  %768 = vmax.xlane.f32.xlu0 %v2226_v38 }
  0x62   :  { %v603_v32 = vmul.f32 %v2647_v29, %v2110_v15  ;;  %v669_v1 = vmul.f32 %v2648_v39, %v2123_v50  ;;  %v2651_v9 = vunpack.c.l.bf16 %v1900_v41  ;;  %v2244_v37 = vadd.f32 %v733_v5, %v683_v2 }
  0x63   :  { %v735_v61 = vmul.f32 %v2649_v10, %v2126_v3  ;;  %v554_v11 = vmul.f32 %v2650_v36, %v2107_v13  ;;  %v684_v33 = vadd.f32 %v668_v25, %v618_v8  ;;  %v2652_v48 = vunpack.c.l.bf16 %v1902_v56 }
  0x64   :  { %v604_v6 = vmul.f32 %v2651_v9, %v2110_v15  ;;  %v619_v20 = vadd.f32 %v603_v32, %v553_v18  ;;  %v2653_v0 = vunpack.c.h.bf16 %v1892_v45  ;;  %v2654_v26 = vunpack.c.h.bf16 %v1900_v41  ;;  %770 = vmax.xlane.f32.xlu1 %v2244_v37 }
  0x65   :  { %v670_v21 = vmul.f32 %v2652_v48, %v2123_v50  ;;  %v2256_v4 = vadd.f32 %v734_v12, %v684_v33  ;;  %v2655_v25 = vunpack.c.l.bf16 %v1904_v57  ;;  %v2656_v2 = vunpack.c.h.bf16 %v1902_v56 }
  0x66   :  { %v620_v54 = vadd.f32 %v604_v6, %v554_v11  ;;  %v555_v24 = vmul.f32 %v2653_v0, %v2107_v13  ;;  %v605_v27 = vmul.f32 %v2654_v26, %v2110_v15  ;;  %v685_v5 = vadd.f32 %v669_v1, %v619_v20 }
  0x67   :  { %v736_v18 = vmul.f32 %v2655_v25, %v2126_v3  ;;  %v671_v8 = vmul.f32 %v2656_v2, %v2123_v50  ;;  %v2657_v32 = vunpack.c.l.bf16 %v1936_v30  ;;  %v2658_v39 = vunpack.c.l.bf16 %v1938_v58  ;;  %772 = vmax.xlane.f32.xlu0 %v2256_v4 }
  0x68   :  { %v686_v29 = vadd.f32 %v670_v21, %v620_v54  ;;  %v621_v45 = vadd.f32 %v605_v27, %v555_v24  ;;  %v2271_v1 = vadd.f32 %v735_v61, %v685_v5  ;;  %v2659_v10 = vunpack.c.h.bf16 %v1904_v57 }
  0x69   :  { %v556_v41 = vmul.f32 %v2657_v32, %v2107_v13  ;;  %v606_v12 = vmul.f32 %v2658_v39, %v2110_v15  ;;  %v2660_v56 = vunpack.c.l.bf16 %v1950_v62  ;;  %v2661_v9 = vunpack.c.h.bf16 %v1936_v30 }
  0x6a   :  { %v737_v36 = vmul.f32 %v2659_v10, %v2126_v3  ;;  %v687_v33 = vadd.f32 %v671_v8, %v621_v45  ;;  %v2662_v48 = vunpack.c.l.bf16 %v1963_v34  ;;  %v2663_v61 = vunpack.c.h.bf16 %v1938_v58  ;;  %774 = vmax.xlane.f32.xlu1 %v2271_v1 }
  0x6b   :  { %v672_v11 = vmul.f32 %v2660_v56, %v2123_v50  ;;  %v557_v6 = vmul.f32 %v2661_v9, %v2107_v13  ;;  %v622_v20 = vadd.f32 %v606_v12, %v556_v41  ;;  %v2289_v57 = vadd.f32 %v736_v18, %v686_v29 }
  0x6c   :  { %v738_v21 = vmul.f32 %v2662_v48, %v2126_v3  ;;  %v607_v54 = vmul.f32 %v2663_v61, %v2110_v15  ;;  %v2664_v0 = vunpack.c.h.bf16 %v1950_v62  ;;  %v2665_v30 = vunpack.c.l.bf16 %v1987_v53 }
  0x6d   :  { %v2666_v27 = vunpack.c.l.bf16 %v1992_v17  ;;  %v688_v25 = vadd.f32 %v672_v11, %v622_v20  ;;  %v2667_v58 = vunpack.c.h.bf16 %v1963_v34  ;;  %v2668_v18 = vunpack.c.l.bf16 %v1994_v16  ;;  %776 = vmax.xlane.f32.xlu0 %v2289_v57 }
  0x6e   :  { %v673_v24 = vmul.f32 %v2664_v0, %v2123_v50  ;;  %v558_v26 = vmul.f32 %v2665_v30, %v2107_v13  ;;  %v623_v2 = vadd.f32 %v607_v54, %v557_v6  ;;  %v2307_v62 = vadd.f32 %v737_v36, %v687_v33 }
  0x6f   :  { %v608_v5 = vmul.f32 %v2666_v27, %v2110_v15  ;;  %v739_v8 = vmul.f32 %v2667_v58, %v2126_v3  ;;  %v674_v29 = vmul.f32 %v2668_v18, %v2123_v50  ;;  %v2669_v32 = vunpack.c.h.bf16 %v1987_v53 }
  0x70   :  { %v2670_v39 = vunpack.c.h.bf16 %v1992_v17  ;;  %v2315_v10 = vadd.f32 %v738_v21, %v688_v25  ;;  %v689_v34 = vadd.f32 %v673_v24, %v623_v2  ;;  %v2671_v56 = vunpack.c.l.bf16 %v2006_v31  ;;  %778 = vmax.xlane.f32.xlu1 %v2307_v62 }
  0x71   :  { %v624_v45 = vadd.f32 %v608_v5, %v558_v26  ;;  %v559_v41 = vmul.f32 %v2669_v32, %v2107_v13  ;;  %v2672_v36 = vunpack.c.h.bf16 %v1994_v16  ;;  %v2673_v33 = vunpack.c.l.bf16 %v2028_v46 }
  0x72   :  { %v609_v12 = vmul.f32 %v2670_v39, %v2110_v15  ;;  %v740_v11 = vmul.f32 %v2671_v56, %v2126_v3  ;;  %v2674_v20 = vunpack.c.l.bf16 %v2037_v23  ;;  %v2675_v21 = vunpack.c.h.bf16 %v2006_v31  ;;  %780 = vmax.xlane.f32.xlu0 %v2315_v10 }
  0x73   :  { %v675_v9 = vmul.f32 %v2672_v36, %v2123_v50  ;;  %v690_v6 = vadd.f32 %v674_v29, %v624_v45  ;;  %v560_v17 = vmul.f32 %v2673_v33, %v2107_v13  ;;  %v2676_v16 = vunpack.c.l.bf16 %v2039_v44 }
  0x74   :  { %v625_v53 = vadd.f32 %v609_v12, %v559_v41  ;;  %v610_v48 = vmul.f32 %v2674_v20, %v2110_v15  ;;  %v741_v61 = vmul.f32 %v2675_v21, %v2126_v3  ;;  %v2677_v0 = vunpack.c.h.bf16 %v2028_v46 }
  0x75   :  { %v676_v54 = vmul.f32 %v2676_v16, %v2123_v50  ;;  %v2340_v30 = vadd.f32 %v739_v8, %v689_v34  ;;  %v2678_v5 = vunpack.c.h.bf16 %v2037_v23  ;;  %v2679_v31 = vunpack.c.h.bf16 %v2039_v44 }
  0x76   :  { %v561_v24 = vmul.f32 %v2677_v0, %v2107_v13  ;;  %v691_v26 = vadd.f32 %v675_v9, %v625_v53  ;;  %v626_v27 = vadd.f32 %v610_v48, %v560_v17  ;;  %v2349_v58 = vadd.f32 %v740_v11, %v690_v6 }
  0x77   :  { %v611_v25 = vmul.f32 %v2678_v5, %v2110_v15  ;;  %v677_v2 = vmul.f32 %v2679_v31, %v2123_v50  ;;  %v2680_v13 = vunpack.c.l.bf16 %v2054_v7  ;;  %782 = vmax.xlane.f32.xlu1 %v2340_v30  ;;  %v2681_v15 = vunpack.c.h.bf16 %v2054_v7 }
  0x78   :  { %v692_v46 = vadd.f32 %v676_v54, %v626_v27  ;;  %v2355_v29 = vadd.f32 %v741_v61, %v691_v26  ;;  %784 = vmax.xlane.f32.xlu0 %v2349_v58 }
  0x79   :  { %v742_v8 = vmul.f32 %v2680_v13, %v2126_v3  ;;  %v627_v18 = vadd.f32 %v611_v25, %v561_v24  ;;  %v743_v44 = vmul.f32 %v2681_v15, %v2126_v3 }
  0x7b   :  { %v693_v23 = vadd.f32 %v677_v2, %v627_v18  ;;  %v2361_v50 = vadd.f32 %v742_v8, %v692_v46  ;;  %786 = vmax.xlane.f32.xlu1 %v2355_v29  ;;  %v2682_v2 = vld [vmem:[#allocation11_spill] sm:$0xff]  ;;  %v2683_v18 = vld [vmem:[#allocation12_spill] sm:$0xff] }
  0x7d   :  { %v2364_v45 = vadd.f32 %v743_v44, %v693_v23  ;;  %788 = vmax.xlane.f32.xlu0 %v2361_v50 }
  0x7f   :  { %790 = vmax.xlane.f32.xlu1 %v2364_v45 }
  0xbb   :  { %v289_v32 = vpop.xlane.xlu0 %288 }
  0xbc   :  { %v320_v41 = vsub.f32 %v1837_v60, %v289_v32  ;;  %v293_v39 = vpop.xlane.xlu1 %292 }
  0xbd   :  { %v322_v12 = vsub.f32 %v1849_v40, %v293_v39 }
  0xbe   :  { %v336_v7 = vmul.f32 1.442695, %v320_v41  ;;  %v2684_v41 = vld [vmem:[#allocation13_spill] sm:$0xff] }
  0xbf   :  { %v340_v3 = vmul.f32 1.442695, %v322_v12  ;;  %v291_v34 = vpop.xlane.xlu0 %290 }
  0xc0   :  { %1485 = vpow2.f32 %v336_v7  ;;  %v321_v56 = vsub.f32 %v1865_v49, %v291_v34  ;;  %v295_v11 = vpop.xlane.xlu1 %294 }
  0xc1   :  { %v323_v36 = vsub.f32 %v1872_v55, %v295_v11  ;;  %1487 = vpow2.f32 %v340_v3  ;;  %v2685_v3 = vld [vmem:[#allocation14_spill] sm:$0xff] }
  0xc2   :  { %v338_v9 = vmul.f32 1.442695, %v321_v56 }
  0xc3   :  { %v342_v6 = vmul.f32 1.442695, %v323_v36  ;;  %v297_v53 = vpop.xlane.xlu0 %296 }
  0xc4   :  { %1489 = vpow2.f32 %v338_v9  ;;  %v324_v33 = vsub.f32 %v1888_v63, %v297_v53  ;;  %v299_v60 = vpop.xlane.xlu1 %298 }
  0xc5   :  { %v325_v17 = vsub.f32 %v1906_v59, %v299_v60  ;;  %1491 = vpow2.f32 %v342_v6 }
  0xc6   :  { %v344_v40 = vmul.f32 1.442695, %v324_v33 }
  0xc7   :  { %v346_v20 = vmul.f32 1.442695, %v325_v17  ;;  %v301_v48 = vpop.xlane.xlu0 %300 }
  0xc8   :  { %1493 = vpow2.f32 %v344_v40  ;;  %v326_v49 = vsub.f32 %v1930_v52, %v301_v48 }
  0xc9   :  { %1495 = vpow2.f32 %v346_v20 }
  0xca   :  { %v2375_v21 = vpop.eup %1485  ;;  %v348_v55 = vmul.f32 1.442695, %v326_v49  ;;  %v303_v61 = vpop.xlane.xlu1 %302 }
  0xcb   :  { %v327_v16 = vsub.f32 %v1965_v51, %v303_v61  ;;  %368 = vadd.xlane.f32.xlu0 %v2375_v21  ;;  %v2379_v63 = vpop.eup %1487 }
  0xcc   :  { %1497 = vpow2.f32 %v348_v55 }
  0xcd   :  { %v350_v59 = vmul.f32 1.442695, %v327_v16  ;;  %v305_v54 = vpop.xlane.xlu0 %304 }
  0xce   :  { %v2381_v0 = vpop.eup %1489  ;;  %v328_v24 = vsub.f32 %v1989_v47, %v305_v54 }
  0xcf   :  { %1499 = vpow2.f32 %v350_v59  ;;  %v307_v52 = vpop.xlane.xlu1 %306  ;;  %372 = vadd.xlane.f32.xlu0 %v2379_v63  ;;  %370 = vadd.xlane.f32.xlu1 %v2381_v0  ;;  %v2386_v26 = vpop.eup %1491 }
  0xd0   :  { %v352_v51 = vmul.f32 1.442695, %v328_v24  ;;  %v329_v27 = vsub.f32 %v2009_v35, %v307_v52 }
  0xd1   :  { %v309_v5 = vpop.xlane.xlu0 %308 }
  0xd2   :  { %v2389_v25 = vpop.eup %1493  ;;  %1501 = vpow2.f32 %v352_v51  ;;  %v354_v31 = vmul.f32 1.442695, %v329_v27  ;;  %v330_v46 = vsub.f32 %v2682_v2, %v309_v5 }
  0xd3   :  { %374 = vadd.xlane.f32.xlu1 %v2386_v26  ;;  %376 = vadd.xlane.f32.xlu0 %v2389_v25  ;;  %v2394_v47 = vpop.eup %1495 }
  0xd4   :  { %1503 = vpow2.f32 %v354_v31  ;;  %v356_v13 = vmul.f32 1.442695, %v330_v46  ;;  %v311_v8 = vpop.xlane.xlu1 %310 }
  0xd5   :  { %v331_v23 = vsub.f32 %v2683_v18, %v311_v8 }
  0xd6   :  { %v2397_v15 = vpop.eup %1497  ;;  %1505 = vpow2.f32 %v356_v13 }
  0xd7   :  { %v358_v35 = vmul.f32 1.442695, %v331_v23  ;;  %378 = vadd.xlane.f32.xlu1 %v2394_v47  ;;  %380 = vadd.xlane.f32.xlu0 %v2397_v15 }
  0xd8   :  { %v313_v44 = vpop.xlane.xlu0 %312 }
  0xd9   :  { %v2401_v32 = vpop.eup %1499  ;;  %1507 = vpow2.f32 %v358_v35  ;;  %v332_v39 = vsub.f32 %v2684_v41, %v313_v44 }
  0xda   :  { %v315_v12 = vpop.xlane.xlu1 %314 }
  0xdb   :  { %v360_v7 = vmul.f32 1.442695, %v332_v39  ;;  %v333_v34 = vsub.f32 %v2685_v3, %v315_v12  ;;  %382 = vadd.xlane.f32.xlu1 %v2401_v32 }
  0xdc   :  { %v2406_v56 = vpop.eup %1501 }
  0xdd   :  { %1509 = vpow2.f32 %v360_v7  ;;  %v362_v11 = vmul.f32 1.442695, %v333_v34  ;;  %v317_v36 = vpop.xlane.xlu0 %316  ;;  %384 = vadd.xlane.f32.xlu0 %v2406_v56 }
  0xde   :  { %v2409_v9 = vpop.eup %1503  ;;  %v334_v6 = vsub.f32 %v2131_v22, %v317_v36 }
  0xdf   :  { %1511 = vpow2.f32 %v362_v11  ;;  %v319_v53 = vpop.xlane.xlu1 %318  ;;  %386 = vadd.xlane.f32.xlu1 %v2409_v9 }
  0xe0   :  { %v2413_v33 = vpop.eup %1505  ;;  %v364_v60 = vmul.f32 1.442695, %v334_v6  ;;  %v335_v17 = vsub.f32 %v2149_v19, %v319_v53 }
  0xe1   :  { %388 = vadd.xlane.f32.xlu0 %v2413_v33 }
  0xe2   :  { %1513 = vpow2.f32 %v364_v60  ;;  %v366_v40 = vmul.f32 1.442695, %v335_v17 }
  0xe3   :  { %v2417_v48 = vpop.eup %1507 }
  0xe4   :  { %v761_v20 = vpop.xlane.xlu0 %760  ;;  %1515 = vpow2.f32 %v366_v40  ;;  %390 = vadd.xlane.f32.xlu1 %v2417_v48 }
  0xe5   :  { %v792_v49 = vsub.f32 %v2176_v28, %v761_v20 }
  0xe7   :  { %v808_v55 = vmul.f32 1.442695, %v792_v49  ;;  %v2422_v59 = vpop.eup %1509 }
  0xe8   :  { %v763_v22 = vpop.xlane.xlu1 %762  ;;  %392 = vadd.xlane.f32.xlu0 %v2422_v59 }
  0xe9   :  { %v793_v61 = vsub.f32 %v2191_v14, %v763_v22  ;;  %v765_v16 = vpop.xlane.xlu0 %764  ;;  %1517 = vpow2.f32 %v808_v55  ;;  %v2426_v52 = vpop.eup %1511 }
  0xea   :  { %v794_v54 = vsub.f32 %v2199_v43, %v765_v16  ;;  %394 = vadd.xlane.f32.xlu1 %v2426_v52 }
  0xeb   :  { %v810_v19 = vmul.f32 1.442695, %v793_v61 }
  0xec   :  { %v767_v24 = vpop.xlane.xlu1 %766  ;;  %v812_v28 = vmul.f32 1.442695, %v794_v54  ;;  %v2431_v31 = vpop.eup %1513 }
  0xed   :  { %1519 = vpow2.f32 %v810_v19  ;;  %v795_v51 = vsub.f32 %v2214_v42, %v767_v24  ;;  %396 = vadd.xlane.f32.xlu0 %v2431_v31 }
  0xee   :  { %v769_v27 = vpop.xlane.xlu0 %768  ;;  %1521 = vpow2.f32 %v812_v28  ;;  %v2435_v13 = vpop.eup %1515 }
  0xef   :  { %v814_v14 = vmul.f32 1.442695, %v795_v51  ;;  %v796_v5 = vsub.f32 %v2226_v38, %v769_v27  ;;  %398 = vadd.xlane.f32.xlu1 %v2435_v13 }
  0xf1   :  { %v771_v2 = vpop.xlane.xlu1 %770  ;;  %1523 = vpow2.f32 %v814_v14  ;;  %v816_v43 = vmul.f32 1.442695, %v796_v5 }
  0xf2   :  { %v797_v46 = vsub.f32 %v2244_v37, %v771_v2 }
  0xf3   :  { %1525 = vpow2.f32 %v816_v43  ;;  %v2439_v38 = vpop.eup %1517 }
  0xf4   :  { %v773_v8 = vpop.xlane.xlu0 %772  ;;  %v818_v42 = vmul.f32 1.442695, %v797_v46  ;;  %840 = vadd.xlane.f32.xlu0 %v2439_v38 }
  0xf5   :  { %v798_v18 = vsub.f32 %v2256_v4, %v773_v8 }
  0xf6   :  { %1527 = vpow2.f32 %v818_v42 }
  0xf7   :  { %v775_v23 = vpop.xlane.xlu1 %774  ;;  %v820_v35 = vmul.f32 1.442695, %v798_v18  ;;  %v2443_v41 = vpop.eup %1519 }
  0xf8   :  { %v799_v44 = vsub.f32 %v2271_v1, %v775_v23  ;;  %842 = vadd.xlane.f32.xlu1 %v2443_v41  ;;  %v2447_v4 = vpop.eup %1521 }
  0xf9   :  { %1529 = vpow2.f32 %v820_v35  ;;  %844 = vadd.xlane.f32.xlu0 %v2447_v4 }
  0xfa   :  { %v777_v37 = vpop.xlane.xlu0 %776  ;;  %v822_v39 = vmul.f32 1.442695, %v799_v44 }
  0xfb   :  { %v800_v12 = vsub.f32 %v2289_v57, %v777_v37  ;;  %v2451_v11 = vpop.eup %1523 }
  0xfc   :  { %1531 = vpow2.f32 %v822_v39  ;;  %846 = vadd.xlane.f32.xlu1 %v2451_v11 }
  0xfd   :  { %v779_v7 = vpop.xlane.xlu1 %778  ;;  %v824_v3 = vmul.f32 1.442695, %v800_v12  ;;  %v2455_v57 = vpop.eup %1525 }
  0xfe   :  { %v801_v34 = vsub.f32 %v2307_v62, %v779_v7  ;;  %848 = vadd.xlane.f32.xlu0 %v2455_v57 }
  0xff   :  { %v781_v1 = vpop.xlane.xlu0 %780  ;;  %1533 = vpow2.f32 %v824_v3 }
 0x100   :  { %v826_v36 = vmul.f32 1.442695, %v801_v34  ;;  %v802_v6 = vsub.f32 %v2315_v10, %v781_v1  ;;  %v2459_v40 = vpop.eup %1527 }
 0x101   :  { %850 = vadd.xlane.f32.xlu1 %v2459_v40 }
 0x102   :  { %1535 = vpow2.f32 %v826_v36  ;;  %v828_v60 = vmul.f32 1.442695, %v802_v6 }
 0x103   :  { %v2463_v10 = vpop.eup %1529 }
 0x104   :  { %v783_v53 = vpop.xlane.xlu1 %782  ;;  %1537 = vpow2.f32 %v828_v60  ;;  %852 = vadd.xlane.f32.xlu0 %v2463_v10 }
 0x105   :  { %v803_v17 = vsub.f32 %v2340_v30, %v783_v53  ;;  %v785_v62 = vpop.xlane.xlu0 %784 }
 0x106   :  { %v804_v49 = vsub.f32 %v2349_v58, %v785_v62  ;;  %v2467_v16 = vpop.eup %1531 }
 0x107   :  { %v830_v20 = vmul.f32 1.442695, %v803_v17  ;;  %854 = vadd.xlane.f32.xlu1 %v2467_v16 }
 0x108   :  { %v787_v22 = vpop.xlane.xlu1 %786  ;;  %v832_v55 = vmul.f32 1.442695, %v804_v49 }
 0x109   :  { %1539 = vpow2.f32 %v830_v20  ;;  %v805_v61 = vsub.f32 %v2355_v29, %v787_v22  ;;  %v2471_v58 = vpop.eup %1533 }
 0x10a   :  { %v789_v30 = vpop.xlane.xlu0 %788  ;;  %1541 = vpow2.f32 %v832_v55  ;;  %856 = vadd.xlane.f32.xlu0 %v2471_v58 }
 0x10b   :  { %v834_v19 = vmul.f32 1.442695, %v805_v61  ;;  %v806_v54 = vsub.f32 %v2361_v50, %v789_v30 }
 0x10c   :  { %v791_v24 = vpop.xlane.xlu1 %790  ;;  %v2475_v29 = vpop.eup %1535 }
 0x10d   :  { %1543 = vpow2.f32 %v834_v19  ;;  %v836_v28 = vmul.f32 1.442695, %v806_v54  ;;  %v807_v51 = vsub.f32 %v2364_v45, %v791_v24  ;;  %858 = vadd.xlane.f32.xlu1 %v2475_v29 }
 0x10e   :  { %v2478_v14 = vpop.eup %1537 }
 0x10f   :  { %1545 = vpow2.f32 %v836_v28  ;;  %v838_v27 = vmul.f32 1.442695, %v807_v51  ;;  %860 = vadd.xlane.f32.xlu0 %v2478_v14 }
 0x111   :  { %1547 = vpow2.f32 %v838_v27 }
 0x113   :  { %v2481_v50 = vpop.eup %1539 }
 0x114   :  { %862 = vadd.xlane.f32.xlu1 %v2481_v50  ;;  %v2484_v5 = vpop.eup %1541 }
 0x115   :  { %864 = vadd.xlane.f32.xlu0 %v2484_v5 }
 0x117   :  { %v2487_v45 = vpop.eup %1543 }
 0x118   :  { %866 = vadd.xlane.f32.xlu1 %v2487_v45 }
 0x119   :  { %v2490_v2 = vpop.eup %1545 }
 0x11a   :  { %868 = vadd.xlane.f32.xlu0 %v2490_v2 }
 0x11b   :  { %v2493_v43 = vpop.eup %1547 }
 0x11c   :  { %870 = vadd.xlane.f32.xlu1 %v2493_v43 }
 0x158   :  { %v369_v46 = vpop.xlane.xlu0 %368 }
 0x159   :  { %1549 = vrcp.f32 %v369_v46 }
 0x15c   :  { %v371_v8 = vpop.xlane.xlu1 %370  ;;  %v373_v42 = vpop.xlane.xlu0 %372 }
 0x15d   :  { %1551 = vrcp.f32 %v371_v8 }
 0x15e   :  { %1553 = vrcp.f32 %v373_v42 }
 0x160   :  { %v375_v18 = vpop.xlane.xlu1 %374  ;;  %v377_v23 = vpop.xlane.xlu0 %376 }
 0x161   :  { %1555 = vrcp.f32 %v375_v18 }
 0x162   :  { %1557 = vrcp.f32 %v377_v23 }
 0x163   :  { %v1550_v37 = vpop.eup %1549 }
 0x164   :  { %v379_v35 = vpop.xlane.xlu1 %378  ;;  %v381_v44 = vpop.xlane.xlu0 %380  ;;  %v416_v12 = vmul.f32 %v1550_v37, %v2375_v21 }
 0x165   :  { %1559 = vrcp.f32 %v379_v35 }
 0x166   :  { %1561 = vrcp.f32 %v381_v44 }
 0x167   :  { %v1552_v39 = vpop.eup %1551 }
 0x168   :  { %v417_v7 = vmul.f32 %v1552_v39, %v2381_v0  ;;  %v383_v3 = vpop.xlane.xlu1 %382  ;;  %v1554_v34 = vpop.eup %1553 }
 0x169   :  { %1563 = vrcp.f32 %v383_v3  ;;  %v418_v53 = vmul.f32 %v1554_v34, %v2379_v63 }
 0x16a   :  { %v1205_v1 = vpack.c.bf16 %v417_v7, %v416_v12  ;;  %v385_v36 = vpop.xlane.xlu0 %384 }
 0x16b   :  { %v1556_v6 = vpop.eup %1555  ;;  %1565 = vrcp.f32 %v385_v36 }
 0x16c   :  { %1206 = vst [vmem:[#allocation7] sm:$0xff] %v1205_v1   ;;  %v419_v60 = vmul.f32 %v1556_v6, %v2386_v26  ;;  %v387_v17 = vpop.xlane.xlu1 %386  ;;  %v1558_v62 = vpop.eup %1557 }
 0x16d   :  { %1567 = vrcp.f32 %v387_v17  ;;  %v420_v0 = vmul.f32 %v1558_v62, %v2389_v25 }
 0x16e   :  { %v1210_v20 = vpack.c.bf16 %v419_v60, %v418_v53  ;;  %v389_v49 = vpop.xlane.xlu0 %388 }
 0x16f   :  { %v1560_v21 = vpop.eup %1559  ;;  %1569 = vrcp.f32 %v389_v49 }
 0x170   :  { %1438 = vst [vmem:[#allocation7 + $0x8] sm:$0xff] %v1210_v20   ;;  %v421_v22 = vmul.f32 %v1560_v21, %v2394_v47  ;;  %v1562_v55 = vpop.eup %1561 }
 0x171   :  { %v391_v61 = vpop.xlane.xlu1 %390  ;;  %v422_v63 = vmul.f32 %v1562_v55, %v2397_v15 }
 0x172   :  { %v1215_v30 = vpack.c.bf16 %v421_v22, %v420_v0  ;;  %1571 = vrcp.f32 %v391_v61 }
 0x173   :  { %v1564_v19 = vpop.eup %1563 }
 0x174   :  { %1439 = vst [vmem:[#allocation7 + $0x10] sm:$0xff] %v1215_v30   ;;  %v423_v26 = vmul.f32 %v1564_v19, %v2401_v32 }
 0x175   :  { %v1566_v54 = vpop.eup %1565  ;;  %v393_v24 = vpop.xlane.xlu0 %392 }
 0x176   :  { %v1220_v28 = vpack.c.bf16 %v423_v26, %v422_v63  ;;  %1573 = vrcp.f32 %v393_v24  ;;  %v424_v25 = vmul.f32 %v1566_v54, %v2406_v56 }
 0x177   :  { %v1568_v51 = vpop.eup %1567  ;;  %v395_v27 = vpop.xlane.xlu1 %394 }
 0x178   :  { %1440 = vst [vmem:[#allocation7 + $0x18] sm:$0xff] %v1220_v28   ;;  %v425_v47 = vmul.f32 %v1568_v51, %v2409_v9  ;;  %1575 = vrcp.f32 %v395_v27 }
 0x179   :  { %v1570_v46 = vpop.eup %1569 }
 0x17a   :  { %v1225_v8 = vpack.c.bf16 %v425_v47, %v424_v25  ;;  %v397_v42 = vpop.xlane.xlu0 %396  ;;  %v426_v32 = vmul.f32 %v1570_v46, %v2413_v33 }
 0x17b   :  { %1577 = vrcp.f32 %v397_v42 }
 0x17c   :  { %v1572_v18 = vpop.eup %1571  ;;  %1441 = vst [vmem:[#allocation7 + $0x20] sm:$0xff] %v1225_v8   ;;  %v399_v15 = vpop.xlane.xlu1 %398 }
 0x17d   :  { %v427_v23 = vmul.f32 %v1572_v18, %v2417_v48  ;;  %1579 = vrcp.f32 %v399_v15 }
 0x17f   :  { %v1230_v35 = vpack.c.bf16 %v427_v23, %v426_v32 }
 0x180   :  { %v1574_v37 = vpop.eup %1573 }
 0x181   :  { %v841_v44 = vpop.xlane.xlu0 %840  ;;  %1442 = vst [vmem:[#allocation7 + $0x28] sm:$0xff] %v1230_v35   ;;  %v428_v39 = vmul.f32 %v1574_v37, %v2422_v59 }
 0x182   :  { %1581 = vrcp.f32 %v841_v44  ;;  %v1576_v9 = vpop.eup %1575 }
 0x183   :  { %v429_v12 = vmul.f32 %v1576_v9, %v2426_v52 }
 0x185   :  { %v843_v56 = vpop.xlane.xlu1 %842  ;;  %v1578_v3 = vpop.eup %1577  ;;  %v1235_v34 = vpack.c.bf16 %v429_v12, %v428_v39 }
 0x186   :  { %1583 = vrcp.f32 %v843_v56  ;;  %v845_v7 = vpop.xlane.xlu0 %844  ;;  %v430_v36 = vmul.f32 %v1578_v3, %v2431_v31 }
 0x187   :  { %1585 = vrcp.f32 %v845_v7  ;;  %v1580_v48 = vpop.eup %1579  ;;  %1443 = vst [vmem:[#allocation7 + $0x30] sm:$0xff] %v1235_v34  }
 0x188   :  { %v431_v6 = vmul.f32 %v1580_v48, %v2435_v13 }
 0x189   :  { %v847_v33 = vpop.xlane.xlu1 %846 }
 0x18a   :  { %1587 = vrcp.f32 %v847_v33  ;;  %v1240_v17 = vpack.c.bf16 %v431_v6, %v430_v36 }
 0x18b   :  { %v849_v1 = vpop.xlane.xlu0 %848 }
 0x18c   :  { %1589 = vrcp.f32 %v849_v1  ;;  %v1582_v60 = vpop.eup %1581  ;;  %1444 = vst [vmem:[#allocation7 + $0x38] sm:$0xff] %v1240_v17  }
 0x18d   :  { %v888_v62 = vmul.f32 %v1582_v60, %v2439_v38 }
 0x18e   :  { %v851_v53 = vpop.xlane.xlu1 %850 }
 0x18f   :  { %1591 = vrcp.f32 %v851_v53 }
 0x190   :  { %v1584_v52 = vpop.eup %1583 }
 0x191   :  { %v853_v59 = vpop.xlane.xlu0 %852  ;;  %v889_v20 = vmul.f32 %v1584_v52, %v2443_v41  ;;  %v1586_v21 = vpop.eup %1585 }
 0x192   :  { %1593 = vrcp.f32 %v853_v59  ;;  %v890_v13 = vmul.f32 %v1586_v21, %v2447_v4 }
 0x193   :  { %v1373_v0 = vpack.c.bf16 %v889_v20, %v888_v62 }
 0x194   :  { %v855_v49 = vpop.xlane.xlu1 %854  ;;  %v1588_v22 = vpop.eup %1587 }
 0x195   :  { %1595 = vrcp.f32 %v855_v49  ;;  %1374 = vst [vmem:[#allocation7 + $0x40] sm:$0xff] %v1373_v0   ;;  %v891_v55 = vmul.f32 %v1588_v22, %v2451_v11 }
 0x196   :  { %v1590_v30 = vpop.eup %1589 }
 0x197   :  { %v857_v31 = vpop.xlane.xlu0 %856  ;;  %v1378_v19 = vpack.c.bf16 %v891_v55, %v890_v13  ;;  %v892_v41 = vmul.f32 %v1590_v30, %v2455_v57 }
 0x198   :  { %1597 = vrcp.f32 %v857_v31 }
 0x199   :  { %v1592_v38 = vpop.eup %1591  ;;  %1473 = vst [vmem:[#allocation7 + $0x48] sm:$0xff] %v1378_v19  }
 0x19a   :  { %v859_v61 = vpop.xlane.xlu1 %858  ;;  %v893_v26 = vmul.f32 %v1592_v38, %v2459_v40 }
 0x19b   :  { %1599 = vrcp.f32 %v859_v61 }
 0x19c   :  { %v861_v63 = vpop.xlane.xlu0 %860  ;;  %v1594_v24 = vpop.eup %1593  ;;  %v1383_v28 = vpack.c.bf16 %v893_v26, %v892_v41 }
 0x19d   :  { %1601 = vrcp.f32 %v861_v63  ;;  %v894_v11 = vmul.f32 %v1594_v24, %v2463_v10 }
 0x19e   :  { %1474 = vst [vmem:[#allocation7 + $0x50] sm:$0xff] %v1383_v28  }
 0x19f   :  { %v1596_v4 = vpop.eup %1595 }
 0x1a0   :  { %v895_v27 = vmul.f32 %v1596_v4, %v2467_v16 }
 0x1a1   :  { %v863_v54 = vpop.xlane.xlu1 %862 }
 0x1a2   :  { %1603 = vrcp.f32 %v863_v54  ;;  %v865_v51 = vpop.xlane.xlu0 %864  ;;  %v1598_v47 = vpop.eup %1597  ;;  %v1388_v46 = vpack.c.bf16 %v895_v27, %v894_v11 }
 0x1a3   :  { %1605 = vrcp.f32 %v865_v51  ;;  %v896_v40 = vmul.f32 %v1598_v47, %v2471_v58 }
 0x1a4   :  { %1475 = vst [vmem:[#allocation7 + $0x58] sm:$0xff] %v1388_v46  }
 0x1a5   :  { %v867_v25 = vpop.xlane.xlu1 %866  ;;  %v1600_v57 = vpop.eup %1599 }
 0x1a6   :  { %1607 = vrcp.f32 %v867_v25  ;;  %v897_v42 = vmul.f32 %v1600_v57, %v2475_v29 }
 0x1a7   :  { %v869_v8 = vpop.xlane.xlu0 %868  ;;  %v1602_v15 = vpop.eup %1601 }
 0x1a8   :  { %1609 = vrcp.f32 %v869_v8  ;;  %v1393_v32 = vpack.c.bf16 %v897_v42, %v896_v40  ;;  %v898_v10 = vmul.f32 %v1602_v15, %v2478_v14 }
 0x1a9   :  { %v871_v18 = vpop.xlane.xlu1 %870 }
 0x1aa   :  { %1611 = vrcp.f32 %v871_v18  ;;  %1476 = vst [vmem:[#allocation7 + $0x60] sm:$0xff] %v1393_v32  }
 0x1ac   :  { %v1604_v23 = vpop.eup %1603 }
 0x1ad   :  { %v899_v16 = vmul.f32 %v1604_v23, %v2481_v50  ;;  %v1606_v35 = vpop.eup %1605 }
 0x1ae   :  { %v900_v56 = vmul.f32 %v1606_v35, %v2484_v5 }
 0x1af   :  { %v1398_v44 = vpack.c.bf16 %v899_v16, %v898_v10 }
 0x1b0   :  { %v1608_v37 = vpop.eup %1607 }
 0x1b1   :  { %1477 = vst [vmem:[#allocation7 + $0x68] sm:$0xff] %v1398_v44   ;;  %v901_v58 = vmul.f32 %v1608_v37, %v2487_v45 }
 0x1b2   :  { %v1610_v9 = vpop.eup %1609 }
 0x1b3   :  { %v1403_v29 = vpack.c.bf16 %v901_v58, %v900_v56  ;;  %v902_v12 = vmul.f32 %v1610_v9, %v2490_v2 }
 0x1b4   :  { %v1612_v39 = vpop.eup %1611 }
 0x1b5   :  { %1478 = vst [vmem:[#allocation7 + $0x70] sm:$0xff] %v1403_v29   ;;  %v903_v14 = vmul.f32 %v1612_v39, %v2493_v43 }
 0x1b7   :  { %v1408_v7 = vpack.c.bf16 %v903_v14, %v902_v12 }
 0x1b9   :  { %1479 = vst [vmem:[#allocation7 + $0x78] sm:$0xff] %v1408_v7  }
 0x1ba   :  { %1656 = shalt.err (!%p1653_p1)
}
 0x1bb   :  { %s1657_s16 = scalar_lea.hbm %s2545_s2, 2048 }
 0x1bc   :  { %p1658_p2 = scmp.ne.s32.totalorder %s2545_s2, %s1657_s16  ;;  %p1661_p3 = scmp.lt.u32.totalorder %s1657_s16, %s2545_s2 }
 0x1be   :  { %p1663_p4 = pnand %p1661_p3, %p1658_p2 }
 0x1c0   :  { %1666 = shalt.err (!%p1663_p4)
}
 0x1c1   :  { %996 = dma.vmem_to_hbm [thread:$0]  %s991_s12, 2048, %s2545_s2, [#allocation4], %s1675_s0, %s1675_s0, %s1676_s29  }
 0x1c2   :  { %1671 = dma.done.wait [#allocation4], 2048  }
 0x1c3   :  { %1672 = vsyncadd [#allocation4], 4294965248 }
 0x1c4   :  { %1000 = vsyncpa [#allocation3], 1 }
 0x1c5   :  { %1001 = vsyncpa [#allocation4], 1 }
 0x1c6   :  { %1002 = vsyncpa [#allocation5], 1 }

</bundles_post_ra>
